<compile_context>
chip_gen: v6e
topology: v6e:2x2x1
jax: 0.10.0
libtpu: 0.0.40
codegen_flags: <defaults>
</compile_context>

<pallas_src>
import jax
import jax.numpy as jnp
from jax.experimental import pallas as pl
from jax.experimental.pallas import tpu as pltpu


def _make_outconv_kernel(cin: int, cout: int, use_vpu: bool):
    """Builds the kernel body. Refs: x (Cin,T), w (Cout,Cin), b (Cout,1), o (Cout,T)."""

    def kernel(x_ref, w_ref, b_ref, o_ref):
        if use_vpu:
            # Tiny contraction: VPU broadcast-multiply-accumulate over Cin
            # (statically unrolled; skips MXU push/pop latency entirely).
            x = x_ref[...].astype(jnp.float32)
            w = w_ref[...].astype(jnp.float32)
            acc = w[:, 0:1] * x[0:1, :]
            for ci in range(1, cin):
                acc = acc + w[:, ci:ci + 1] * x[ci:ci + 1, :]
        else:
            # MXU path: (Cout, Cin) @ (Cin, T) with f32 accumulation.
            acc = jnp.dot(w_ref[...], x_ref[...],
                          preferred_element_type=jnp.float32)
        o_ref[...] = (acc + b_ref[...].astype(jnp.float32)).astype(o_ref.dtype)

    return kernel


def outconv_pallas(x_nchw, weight, bias, *, spatial_tile=2048, compute_dtype=None):
    """1x1 convolution (nn.Conv2d with kernel_size=1), NCHW in / NCHW out.

    Args:
      x_nchw: (N, Cin, H, W) input.
      weight: (Cout, Cin, 1, 1) conv weight (PyTorch layout).
      bias:   (Cout,) conv bias.
      spatial_tile: max lane-dense spatial tile (multiple of 128 enforced).
      compute_dtype: optional (e.g. jnp.bfloat16) to halve HBM traffic for x/W;
        accumulation stays f32 and bias/output stay in the input dtype.
    Returns:
      (N, Cout, H, W) output, same dtype as x.
    """
    N, Cin, H, W = x_nchw.shape
    Cout = weight.shape[0]
    out_dtype = x_nchw.dtype

    HW = H * W
    # Spatial tile: take the full H*W when it fits (no divisibility constraint since
    # the block then equals the full array dim); otherwise a big 128-aligned tile.
    if HW <= spatial_tile:
        T = HW
    else:
        T = max(128, (spatial_tile // 128) * 128)
    HW_pad = ((HW + T - 1) // T) * T

    # Free reshape (contiguous collapse of H, W) — no transpose, no HBM round trip.
    x_flat = x_nchw.reshape(N, Cin, HW)
    if HW_pad != HW:
        # Pad only the ragged tail so the big tile choice isn't hostage to H*W.
        x_flat = jnp.pad(x_flat, ((0, 0), (0, 0), (0, HW_pad - HW)))

    w2d = weight.reshape(Cout, Cin)
    b2d = bias.reshape(Cout, 1).astype(jnp.float32)

    if compute_dtype is not None:
        x_flat = x_flat.astype(compute_dtype)
        w2d = w2d.astype(compute_dtype)

    use_vpu = (Cin <= 8 and Cout <= 8)
    kernel = _make_outconv_kernel(Cin, Cout, use_vpu)

    # VMEM budget: double-buffered x/out tiles + resident weight/bias.
    isz_in = jnp.dtype(x_flat.dtype).itemsize
    isz_out = jnp.dtype(out_dtype).itemsize
    need = (2 * Cin * T * isz_in + 2 * Cout * T * isz_out
            + Cout * Cin * isz_in + Cout * 4)
    # Cap at 64 MiB so the request is always valid on v7x's smaller VMEM.
    vmem_limit = int(min(max(2 * need, 16 * 1024 * 1024), 64 * 1024 * 1024))

    grid = (N, HW_pad // T)

    cost = pl.CostEstimate(
        flops=2 * N * HW_pad * Cin * Cout,
        transcendentals=0,
        bytes_accessed=N * HW_pad * (Cin * isz_in + Cout * isz_out)
        + Cout * Cin * isz_in + Cout * 4,
    )

    out_flat = pl.pallas_call(
        kernel,
        out_shape=jax.ShapeDtypeStruct((N, Cout, HW_pad), out_dtype),
        grid_spec=pltpu.PrefetchScalarGridSpec(
            num_scalar_prefetch=0,
            grid=grid,
            in_specs=[
                # x: batch dim squeezed, full channel axis, lane-dense spatial tile.
                pl.BlockSpec((None, Cin, T), lambda n, s: (n, 0, s)),
                # weight / bias: constant index_map -> stay resident in VMEM.
                pl.BlockSpec((Cout, Cin), lambda n, s: (0, 0)),
                pl.BlockSpec((Cout, 1), lambda n, s: (0, 0)),
            ],
            out_specs=pl.BlockSpec((None, Cout, T), lambda n, s: (n, 0, s)),
        ),
        compiler_params=pltpu.CompilerParams(
            dimension_semantics=("parallel", "parallel"),
            vmem_limit_bytes=vmem_limit,
        ),
        cost_estimate=cost,
    )(x_flat, w2d, b2d)

    # Drop spatial padding (no-op when HW_pad == HW) and restore NCHW — free reshape.
    return out_flat[:, :, :HW].reshape(N, Cout, H, W)


def init_outconv_params(key, in_channels, out_channels, dtype=jnp.float32):
    """Deterministic Conv2d(kernel_size=1) parameter init (PyTorch-style)."""
    kw, kb = jax.random.split(key)
    fan_in = in_channels  # kernel_size = 1x1
    bound = 1.0 / jnp.sqrt(fan_in)
    weight = jax.random.uniform(
        kw, (out_channels, in_channels, 1, 1), dtype, -bound, bound)
    bias = jax.random.uniform(kb, (out_channels,), dtype, -bound, bound)
    return weight, bias


if __name__ == "__main__":
    key = jax.random.PRNGKey(0)
    k_x, k_p = jax.random.split(key)

    # Small-channel case (the typical OutConv): exercises the VPU broadcast-MAC path.
    N, Cin, H, Wd = 2, 4, 16, 16
    Cout = 3
    x = jax.random.normal(k_x, (N, Cin, H, Wd), dtype=jnp.float32)
    weight, bias = init_outconv_params(k_p, Cin, Cout)

    out = jax.block_until_ready(outconv_pallas(x, weight, bias))
    ref = jnp.einsum("nchw,oc->nohw", x, weight.reshape(Cout, Cin)) \
        + bias.reshape(1, Cout, 1, 1)
    assert out.shape == (N, Cout, H, Wd)
    assert jnp.allclose(out, ref, atol=1e-5, rtol=1e-5)

    # Wider-channel case: exercises the MXU path.
    N2, Cin2, H2, W2, Cout2 = 1, 32, 16, 16, 16
    x2 = jax.random.normal(jax.random.PRNGKey(1), (N2, Cin2, H2, W2), jnp.float32)
    w2, b2 = init_outconv_params(jax.random.PRNGKey(2), Cin2, Cout2)
    out2 = jax.block_until_ready(outconv_pallas(x2, w2, b2))
    ref2 = jnp.einsum("nchw,oc->nohw", x2, w2.reshape(Cout2, Cin2)) \
        + b2.reshape(1, Cout2, 1, 1)
    assert out2.shape == (N2, Cout2, H2, W2)
    assert jnp.allclose(out2, ref2, atol=1e-4, rtol=1e-4)

    print("KERNEL_OK")
</pallas_src>

<mosaic_0001>
module attributes {stable_mosaic.version = 11 : i64} {
  func.func @kernel(%arg0: i32, %arg1: i32, %arg2: memref<1x4x256xf32, #tpu.memory_space<vmem>>, %arg3: memref<3x4xf32, #tpu.memory_space<vmem>>, %arg4: memref<3x1xf32, #tpu.memory_space<vmem>>, %arg5: memref<1x3x256xf32, #tpu.memory_space<vmem>>) attributes {dimension_semantics = [#tpu.dimension_semantics<parallel>, #tpu.dimension_semantics<parallel>], iteration_bounds = array<i64: 2, 1>, scalar_prefetch = 0 : i64, scratch_operands = 0 : i64, tpu.core_type = #tpu.core_type<tc>, window_params = [{transform_indices = @transform_0, window_bounds = array<i64: 1, 4, 256>}, {pipeline_mode = #tpu.pipeline_mode<synchronous>, transform_indices = @transform_1, window_bounds = array<i64: 3, 4>}, {pipeline_mode = #tpu.pipeline_mode<synchronous>, transform_indices = @transform_2, window_bounds = array<i64: 3, 1>}, {transform_indices = @transform_3, window_bounds = array<i64: 1, 3, 256>}]} {
    %c0 = arith.constant 0 : index
    %c0_0 = arith.constant 0 : index
    %c0_1 = arith.constant 0 : index
    %0 = vector.load %arg2[%c0, %c0_0, %c0_1] : memref<1x4x256xf32, #tpu.memory_space<vmem>>, vector<1x4x256xf32>
    %1 = vector.shape_cast %0 : vector<1x4x256xf32> to vector<4x256xf32>
    %c0_2 = arith.constant 0 : index
    %c0_3 = arith.constant 0 : index
    %2 = vector.load %arg3[%c0_2, %c0_3] : memref<3x4xf32, #tpu.memory_space<vmem>>, vector<3x4xf32>
    %3 = vector.extract_strided_slice %2 {offsets = [0, 0], sizes = [3, 1], strides = [1, 1]} : vector<3x4xf32> to vector<3x1xf32>
    %4 = vector.extract_strided_slice %1 {offsets = [0, 0], sizes = [1, 256], strides = [1, 1]} : vector<4x256xf32> to vector<1x256xf32>
    %5 = vector.broadcast %3 : vector<3x1xf32> to vector<3x256xf32>
    %6 = vector.broadcast %4 : vector<1x256xf32> to vector<3x256xf32>
    %7 = arith.mulf %5, %6 : vector<3x256xf32>
    %8 = vector.extract_strided_slice %2 {offsets = [0, 1], sizes = [3, 1], strides = [1, 1]} : vector<3x4xf32> to vector<3x1xf32>
    %9 = vector.extract_strided_slice %1 {offsets = [1, 0], sizes = [1, 256], strides = [1, 1]} : vector<4x256xf32> to vector<1x256xf32>
    %10 = vector.broadcast %8 : vector<3x1xf32> to vector<3x256xf32>
    %11 = vector.broadcast %9 : vector<1x256xf32> to vector<3x256xf32>
    %12 = arith.mulf %10, %11 : vector<3x256xf32>
    %13 = arith.addf %7, %12 : vector<3x256xf32>
    %14 = vector.extract_strided_slice %2 {offsets = [0, 2], sizes = [3, 1], strides = [1, 1]} : vector<3x4xf32> to vector<3x1xf32>
    %15 = vector.extract_strided_slice %1 {offsets = [2, 0], sizes = [1, 256], strides = [1, 1]} : vector<4x256xf32> to vector<1x256xf32>
    %16 = vector.broadcast %14 : vector<3x1xf32> to vector<3x256xf32>
    %17 = vector.broadcast %15 : vector<1x256xf32> to vector<3x256xf32>
    %18 = arith.mulf %16, %17 : vector<3x256xf32>
    %19 = arith.addf %13, %18 : vector<3x256xf32>
    %20 = vector.extract_strided_slice %2 {offsets = [0, 3], sizes = [3, 1], strides = [1, 1]} : vector<3x4xf32> to vector<3x1xf32>
    %21 = vector.extract_strided_slice %1 {offsets = [3, 0], sizes = [1, 256], strides = [1, 1]} : vector<4x256xf32> to vector<1x256xf32>
    %22 = vector.broadcast %20 : vector<3x1xf32> to vector<3x256xf32>
    %23 = vector.broadcast %21 : vector<1x256xf32> to vector<3x256xf32>
    %24 = arith.mulf %22, %23 : vector<3x256xf32>
    %25 = arith.addf %19, %24 : vector<3x256xf32>
    %c0_4 = arith.constant 0 : index
    %c0_5 = arith.constant 0 : index
    %26 = vector.load %arg4[%c0_4, %c0_5] : memref<3x1xf32, #tpu.memory_space<vmem>>, vector<3x1xf32>
    %27 = vector.broadcast %26 : vector<3x1xf32> to vector<3x256xf32>
    %28 = arith.addf %25, %27 : vector<3x256xf32>
    %c0_6 = arith.constant 0 : index
    %c0_7 = arith.constant 0 : index
    %c0_8 = arith.constant 0 : index
    %29 = vector.load %arg5[%c0_6, %c0_7, %c0_8] : memref<1x3x256xf32, #tpu.memory_space<vmem>>, vector<1x3x256xf32>
    %30 = vector.shape_cast %29 : vector<1x3x256xf32> to vector<3x256xf32>
    %31 = vector.shape_cast %28 : vector<3x256xf32> to vector<1x3x256xf32>
    tpu.vector_store %arg5[%c0_6, %c0_7, %c0_8], %31 {strides = array<i32>} : memref<1x3x256xf32, #tpu.memory_space<vmem>>, vector<1x3x256xf32>,
    return
  }
  func.func @transform_0(%arg0: i32, %arg1: i32) -> (i32, i32, i32) {
    %c0_i32 = arith.constant 0 : i32
    %c0_i32_0 = arith.constant 0 : i32
    return %arg0, %c0_i32, %arg1 : i32, i32, i32
  }
  func.func @transform_1(%arg0: i32, %arg1: i32) -> (i32, i32) {
    %c0_i32 = arith.constant 0 : i32
    %c0_i32_0 = arith.constant 0 : i32
    %c0_i32_1 = arith.constant 0 : i32
    return %c0_i32, %c0_i32_0 : i32, i32
  }
  func.func @transform_2(%arg0: i32, %arg1: i32) -> (i32, i32) {
    %c0_i32 = arith.constant 0 : i32
    %c0_i32_0 = arith.constant 0 : i32
    %c0_i32_1 = arith.constant 0 : i32
    return %c0_i32, %c0_i32_0 : i32, i32
  }
  func.func @transform_3(%arg0: i32, %arg1: i32) -> (i32, i32, i32) {
    %c0_i32 = arith.constant 0 : i32
    %c0_i32_0 = arith.constant 0 : i32
    return %arg0, %c0_i32, %arg1 : i32, i32, i32
  }
}

</mosaic_0001>

<bundles_post_ra>
// kernel: tpu_custom_call.1
= control target key start
LH: loop header
LB: loop body
LE: loop exit
PB: predicated region body
PF: predicated region fallthrough
CT: control target
= control target key end

     0   :  { %8 = vsyncpa [#allocation3], 0  ;;  %s722_s0 = inlined_call_operand.hbm [shape: f32[2,4,256], index: 0, kind: input, shape index: {}]   ;;  %s723_s1 = inlined_call_operand.vmem [shape: f32[3,4], index: 1, kind: input, shape index: {}]   ;;  %s724_s2 = inlined_call_operand.vmem [shape: f32[3,1], index: 2, kind: input, shape index: {}]   ;;  %s725_s3 = inlined_call_operand.vmem [shape: f32[2,3,256], index: 3, kind: output, shape index: {}]  }
   0x1   :  { %10 = vsyncpa [#allocation3 + $0x1], 0  ;;  %s616_s12 = smov 0   ;;  %s618_s13 = smov 0  }
   0x2   :  { %s620_s14 = smov 0   ;;  %s622_s15 = smov 0  }
   0x3   :  { %s624_s16 = smov 0   ;;  %s626_s17 = smov 0  }
   0x4 LB: > { %s431_s18 = sadd.s32 4294967295, %s589_s17   ;;  %s28_s19 = sadd.s32 1, %s585_s16  ;;  %s589_s17 = sphi %s626_s17, %s16_s17   ;;  %s585_s16 = sphi %s624_s16, %s733_s16   ;;  %s581_s15 = sphi %s622_s15, %s732_s15   ;;  %s577_s14 = sphi %s620_s14, %s731_s14   ;;  %s573_s13 = sphi %s618_s13, %s730_s13   ;;  %s569_s12 = sphi %s616_s12, %s729_s12  }
   0x5   : > { %p30_p0 = scmp.ge.s32.totalorder %s28_s19, 2  ;;  %s37_s20 = sadd.s32 1, %s577_s14 }
   0x6   : > { %p44_p1 = scmp.ne.s32.totalorder %s577_s14, %s573_s13  ;;  %p45_p2 = scmp.eq.s32.totalorder %s589_s17, 0 }
   0x7   : > { %s735_s19 = smov (%p30_p0, %s28_s19), 0  ;;  %p50_p4 = scmp.ne.s32.totalorder %s573_s13, %s569_s12 }
   0x8   : > { %p652_p3 = por %p45_p2, %p44_p1  ;;  %s32_s22 = ssub.s32 %s585_s16, %s735_s19 }
   0x9   : > { %p51_p5 = scmp.eq.s32.totalorder %s431_s18, 0  ;;  %p35_p6 = scmp.eq.s32.totalorder %s32_s22, 0 }
   0xa   : > { %p452_p8 = scmp.lt.s32.totalorder %s589_s17, 2  ;;  %s150_s25 = sand.u32 1, %s577_s14  }
   0xb   : > { %p659_p7 = por %p51_p5, %p50_p4  ;;  %s444_s26 = sshll.u32 %s585_s16, 7 }
   0xc   : > { %s665_s24 = scalar_select %p35_p6, %s577_s14, %s37_s20  }
   0xd   : > { %s435_s27 = sshll.u32 %s150_s25, 3  ;;  %s162_s30 = scalar_lea.hbm %s722_s0, %s444_s26 }
   0xe   : > { %s154_s4 = scalar_lea.vmem [#allocation2], %s435_s27  ;;  %p674_p9 = pnand %p452_p8, %p652_p3 }
   0xf   : > { %s164_s5 = sshll.u32 %s154_s4, 4  ;;  %p438_p10 = scmp.ge.s32.totalorder %s589_s17, 1  ;;  %s165_s5 = int_to_ptr.vmem [resolvable:$true] %s164_s5 }
  0x10   : > { %p169_p11 = scmp.lt.s32.totalorder %s589_s17, 3  ;;  %s151_s7 = scalar_lea.sflag [#allocation3], %s150_s25 }
  0x11   : > { %p513_p12 = pneg %p674_p9  ;;  %s524_s8 = scalar_lea.vmem %s165_s5, 128 }
  0x12   : > { %p525_p13 = scmp.ne.s32.totalorder %s165_s5, %s524_s8  ;;  %s591_s9 = smov [#allocation2]  }
  0x13   : > { %s529_s10 = sshll.u32 %s591_s9, 4  ;;  %s530_s10 = int_to_ptr.vmem [resolvable:$false] %s529_s10 }
  0x14   : > { %p527_p0 = pnand %p525_p13, %p513_p12  ;;  %s531_s11 = scalar_lea.vmem %s530_s10, 256 }
  0x15   : > { %p532_p2 = scmp.lt.s32.totalorder %s165_s5, %s530_s10  ;;  %p533_p3 = scmp.lt.s32.totalorder %s531_s11, %s524_s8 }
  0x16   : > { %p528_p1 = pneg %p527_p0 }
  0x17   : > { %p534_p4 = por %p533_p3, %p532_p2 }
  0x19   : > { %p535_p5 = pnand %p534_p4, %p528_p1 }
  0x1b   : > { %538 = shalt.err (!%p535_p5)
}
  0x1c   : > { %451 = dma.hbm_to_vmem [thread:$0]  (!%p674_p9), %s162_s30, 128, %s165_s5, %s151_s7  }
  0x1d   : > { %p170_p6 = pnand %p438_p10, %p169_p11 }
  0x1e   : > { %s175_s12 = sand.u32 (!%p170_p6), 1, %s573_s13  }
  0x1f   : > { %173 = sbr.rel (%p170_p6) target bundleno = 181 (0xb5), region = 32  ;;  %s439_s18 = sshll.u32 (!%p170_p6), %s175_s12, 3 }
  0x20   : > { %s176_s20 = scalar_lea.sflag (!%p170_p6), [#allocation3], %s175_s12  ;;  %s179_s21 = scalar_lea.vmem (!%p170_p6), [#allocation2], %s439_s18 }
  0x24   : > { %564 = dma.done.wait (%p659_p7), %s176_s20, 128  }
  0x25   : > { %566 = vsyncadd (%p659_p7), %s176_s20, 4294967168  ;;  %v592_v0 = vmov 0   ;;  %v593_v1 = vmov 2   ;;  %v218_v2 = vld [vmem:[%s723_s1] sm:$0x7]  ;;  %v594_v3 = vmov 1   ;;  %v225_v6 = vlaneseq }
  0x26   : > { %505 = vset.pattern.permute.xlu0 %v592_v0  ;;  %507 = vset.pattern.permute.xlu1 %v593_v1  ;;  %v595_v4 = vmov 3   ;;  %v323_v5 = vld [vmem:[%s724_s2] sm:$0x7]  ;;  %p208_p7 = scmp.lt.s32.totalorder %s581_s15, 1 }
  0x27   : > { %221 = vperm.xlu0 %505, %v218_v2   ;;  %272 = vperm.xlu1 %507, %v218_v2   ;;  %v226_v7 = vshrl.u32 %v225_v6, 7  ;;  %v217_v12 = vld [vmem:[%s179_s21] sm:$0xff] }
  0x28   : > { %s737_s15 = smov (!%p208_p7, %s581_s15), 1 }
  0x29   : > { %v227_v8 = vsub.s32 0, %v226_v7  ;;  %v231_v9 = vsub.s32 4, %v226_v7  ;;  %v251_v10 = vsub.s32 1, %v226_v7  ;;  %v255_v11 = vsub.s32 5, %v226_v7  ;;  %s445_s23 = sshll.u32 %s737_s15, 3 }
  0x2a   : > { %v277_v13 = vsub.s32 2, %v226_v7  ;;  %v281_v14 = vsub.s32 6, %v226_v7  ;;  %v303_v15 = vsub.s32 3, %v226_v7  ;;  %v307_v16 = vsub.s32 7, %v226_v7  ;;  %s215_s30 = scalar_lea.vmem %s725_s3, %s445_s23 }
  0x2b   : > { %506 = vset.pattern.permute.xlu0 %v594_v3  ;;  %508 = vset.pattern.permute.xlu1 %v595_v4  ;;  %v228_v17 = vrot.slane %v217_v12, %v227_v8  ;;  %v232_v18 = vrot.slane %v217_v12, %v231_v9  ;;  %v252_v19 = vrot.slane %v217_v12, %v251_v10 }
  0x2c   : > { %246 = vperm.xlu0 %506, %v218_v2   ;;  %298 = vperm.xlu1 %508, %v218_v2   ;;  %v256_v20 = vrot.slane %v217_v12, %v255_v11  ;;  %v278_v21 = vrot.slane %v217_v12, %v277_v13  ;;  %v282_v22 = vrot.slane %v217_v12, %v281_v14 }
  0x2d   : > { %v304_v25 = vrot.slane %v217_v12, %v303_v15  ;;  %v308_v26 = vrot.slane %v217_v12, %v307_v16  ;;  %v238_v27 = vrot.slane %v228_v17, %v227_v8  ;;  %v242_v28 = vrot.slane %v232_v18, %v227_v8 }
  0x2e   : > { %v262_v29 = vrot.slane %v252_v19, %v251_v10  ;;  %v266_v30 = vrot.slane %v256_v20, %v251_v10  ;;  %v288_v31 = vrot.slane %v278_v21, %v277_v13  ;;  %v292_v32 = vrot.slane %v282_v22, %v277_v13 }
  0x2f   : > { %v314_v33 = vrot.slane %v304_v25, %v303_v15  ;;  %v318_v34 = vrot.slane %v308_v26, %v303_v15 }
  0x30   : > { %509 = vset.pattern.permute.xlu1 %v592_v0  ;;  %510 = vset.pattern.permute.xlu0 %v592_v0 }
  0x31   : > { %326 = vperm.xlu1 %509, %v323_v5  }
  0xa2   : > { %v222_v23 = vpop.permute.xlu0 %221  ;;  %v273_v24 = vpop.permute.xlu1 %272 }
  0xa3   : > { %v243_v37 = vmul.f32 %v238_v27, %v222_v23  ;;  %v244_v38 = vmul.f32 %v242_v28, %v222_v23  ;;  %v293_v41 = vmul.f32 %v288_v31, %v273_v24  ;;  %v294_v42 = vmul.f32 %v292_v32, %v273_v24 }
  0xa7   : > { %v247_v35 = vpop.permute.xlu0 %246  ;;  %v299_v36 = vpop.permute.xlu1 %298 }
  0xa8   : > { %v267_v39 = vmul.f32 %v262_v29, %v247_v35  ;;  %v268_v40 = vmul.f32 %v266_v30, %v247_v35  ;;  %v319_v45 = vmul.f32 %v314_v33, %v299_v36  ;;  %v320_v46 = vmul.f32 %v318_v34, %v299_v36 }
  0xaa   : > { %v269_v43 = vadd.f32 %v267_v39, %v243_v37  ;;  %v270_v44 = vadd.f32 %v268_v40, %v244_v38 }
  0xac   : > { %v295_v47 = vadd.f32 %v293_v41, %v269_v43  ;;  %v296_v48 = vadd.f32 %v294_v42, %v270_v44  ;;  %v327_v49 = vpop.permute.xlu1 %326 }
  0xae   : > { %v321_v50 = vadd.f32 %v319_v45, %v295_v47  ;;  %v322_v51 = vadd.f32 %v320_v46, %v296_v48 }
  0xb0   : > { %v329_v52 = vadd.f32 %v327_v49, %v321_v50  ;;  %v330_v53 = vadd.f32 %v327_v49, %v322_v51 }
  0xb2   : > { %v333_v54 = vcombine.low %v329_v52, %v330_v53 }
  0xb4   : > { %335 = vst [vmem:[%s215_s30] sm:$0x77] %v333_v54 }
  0xb5 PF: > { %s16_s17 = sadd.s32 1, %s589_s17   ;;  %s729_s12 = smov %s573_s13 }
  0xb6   : > { %p13_p8 = scmp.ge.s32.totalorder %s16_s17, 4   ;;  %s730_s13 = smov %s577_s14 }
  0xb7   : > { %s731_s14 = smov %s665_s24  ;;  %s732_s15 = smov %s585_s16 }
  0xb8   : > { %s733_s16 = smov %s735_s19  ;;  %15 = sbr.rel (!%p13_p8) target bundleno = 4 (0x4), region = 72 }
  0xbd   :  { %366 = vsyncpa [#allocation3], 1 }
  0xbe   :  { %368 = vsyncpa [#allocation3 + $0x1], 1 }

</bundles_post_ra>
